<compile_context>
chip_gen: v5e
topology: v5e:2x2
jax: 0.10.0
libtpu: 0.0.40
codegen_flags: <defaults>
</compile_context>

<pallas_src>
import functools

import jax
import jax.numpy as jnp
from jax.experimental import pallas as pl
from jax.experimental.pallas import tpu as pltpu

LN_EPS = 1e-5
LANES = 128
ROW_ALIGN = 16                      # bf16 packs 2 rows per sublane -> (16, 128) native tiles
VMEM_BUDGET = 32 * 1024 * 1024      # per-call pipeline-buffer budget (fits v7x 64 MiB/TC)
MAX_TK = 512                        # K tile when fin is large (multiple of 128)


def _round_up(x, m):
    return ((x + m - 1) // m) * m


def gcn_classifier_kernel(x_ref, w_ref, b_ref, gamma_ref, beta_ref, o_ref, acc_ref, *,
                          nclass):
    """One (row-tile, K-tile) grid step.

    x: (tn, tk)   bf16/f32
    w: (tk, C_pad) bf16/f32  (W^T, zero-padded lanes)
    b/gamma/beta: (1, C_pad) f32 (zero-padded lanes)
    o: (tn, C_pad) out dtype
    acc: (tn, C_pad) f32 scratch accumulator
    """
    k = pl.program_id(1)

    @pl.when(k == 0)
    def _():
        acc_ref[...] = jnp.zeros_like(acc_ref)

    # Linear (partial K): MXU with low-precision operands, f32 accumulation.
    acc_ref[...] += jnp.dot(x_ref[...], w_ref[...], preferred_element_type=jnp.float32)

    @pl.when(k == pl.num_programs(1) - 1)
    def _():
        y = acc_ref[...] + b_ref[...]

        # LayerNorm over the true nclass features.  Padded lanes of y are exactly zero
        # (zero-padded W and b), so sums over the padded axis equal sums over the real
        # features; divide by the true nclass.  One-pass variance in f32.
        inv_n = jnp.float32(1.0 / nclass)
        s = jnp.sum(y, axis=-1, keepdims=True)
        ss = jnp.sum(y * y, axis=-1, keepdims=True)
        mean = s * inv_n
        var = jnp.maximum(ss * inv_n - mean * mean, 0.0)
        inv_std = jax.lax.rsqrt(var + LN_EPS)

        # Padded lanes of gamma/beta are zero -> padded output lanes are zero.
        o_ref[...] = ((y - mean) * inv_std * gamma_ref[...] + beta_ref[...]).astype(o_ref.dtype)


def _choose_tiles(n, fin, c_pad, x_itemsize, w_itemsize, out_itemsize, block_rows):
    """Pick (tn, tk, fin_pad, w_bufs) so pipeline buffers fit VMEM_BUDGET."""
    # K tiling: whole fin in one step when modest, else 512-wide K tiles (multiple of 128).
    if fin <= 2048:
        tk, fin_pad = fin, fin
    else:
        tk = MAX_TK
        fin_pad = _round_up(fin, tk)
    kt = fin_pad // tk
    w_bufs = 1 if kt == 1 else 2     # grid-invariant W -> single buffer

    fixed = w_bufs * tk * c_pad * w_itemsize + 3 * c_pad * 4          # W + bias/gamma/beta
    per_row = (2 * tk * x_itemsize                                     # x (double-buffered)
               + 2 * c_pad * out_itemsize                              # out (double-buffered)
               + c_pad * 4)                                            # f32 accumulator
    avail = max(VMEM_BUDGET - fixed, per_row * ROW_ALIGN)
    tn_cap = max(ROW_ALIGN, (min(avail // per_row, block_rows) // ROW_ALIGN) * ROW_ALIGN)

    # Row steps: at least what the cap forces; prefer >= 2 (and even) so both v7x
    # TensorCores get work; size tn to the step count to bound row-padding waste.
    steps = pl.cdiv(n, tn_cap)
    if n >= 2 * ROW_ALIGN:
        steps = max(steps, 2)
    if steps > 1 and steps % 2:
        steps += 1
    tn = min(_round_up(pl.cdiv(n, steps), ROW_ALIGN), tn_cap)
    return tn, tk, fin_pad, w_bufs


def gcn_classifier_forward(x, w_t_pad, b_pad, gamma_pad, beta_pad, *, nclass,
                           block_rows=1024, out_dtype=jnp.bfloat16):
    """x: (N, F_in); w_t_pad: (F_in, C_pad); b/gamma/beta: (1, C_pad).

    Returns the PADDED output (n_pad, C_pad); the consumer slices [:N, :nclass]
    (keeps the HBM-bound kernel from paying a second pass over its output here).
    """
    n, fin = x.shape
    c_pad = w_t_pad.shape[1]
    assert c_pad % LANES == 0 and c_pad >= nclass

    x_itemsize = jnp.dtype(x.dtype).itemsize
    w_itemsize = jnp.dtype(w_t_pad.dtype).itemsize
    out_itemsize = jnp.dtype(out_dtype).itemsize

    tn, tk, fin_pad, w_bufs = _choose_tiles(
        n, fin, c_pad, x_itemsize, w_itemsize, out_itemsize, block_rows)
    n_pad = _round_up(n, tn)
    kt = fin_pad // tk

    pad_rows, pad_cols = n_pad - n, fin_pad - fin
    if pad_rows or pad_cols:
        x = jnp.pad(x, ((0, pad_rows), (0, pad_cols)))
    if pad_cols:
        w_t_pad = jnp.pad(w_t_pad, ((0, pad_cols), (0, 0)))

    grid = (n_pad // tn, kt)

    # Explicit VMEM sizing (double-buffered x/out, single/double W, f32 accumulator).
    vmem_bytes = (2 * tn * tk * x_itemsize
                  + w_bufs * tk * c_pad * w_itemsize
                  + 2 * tn * c_pad * out_itemsize
                  + tn * c_pad * 4
                  + 3 * c_pad * 4)
    vmem_limit = min(64 * 1024 * 1024, max(int(vmem_bytes * 1.5) + (4 << 20), 16 << 20))

    bytes_accessed = (n_pad * fin_pad * x_itemsize
                      + fin_pad * c_pad * w_itemsize
                      + 3 * c_pad * 4
                      + n_pad * c_pad * out_itemsize)

    # Grid-invariant params: single buffer (index_map constant -> fetched once anyway).
    const_spec = lambda: pl.BlockSpec((1, c_pad), lambda i, k: (0, 0),
                                      pipeline_mode=pl.Buffered(1))
    if kt == 1:
        w_spec = pl.BlockSpec((tk, c_pad), lambda i, k: (k, 0),
                              pipeline_mode=pl.Buffered(1))
    else:
        w_spec = pl.BlockSpec((tk, c_pad), lambda i, k: (k, 0))

    out = pl.pallas_call(
        functools.partial(gcn_classifier_kernel, nclass=nclass),
        out_shape=jax.ShapeDtypeStruct((n_pad, c_pad), out_dtype),
        grid=grid,
        in_specs=[
            pl.BlockSpec((tn, tk), lambda i, k: (i, k)),     # x: rows x K tiles
            w_spec,                                          # W^T (padded lanes)
            const_spec(),                                    # bias
            const_spec(),                                    # gamma
            const_spec(),                                    # beta
        ],
        out_specs=pl.BlockSpec((tn, c_pad), lambda i, k: (i, 0)),
        scratch_shapes=[pltpu.VMEM((tn, c_pad), jnp.float32)],
        compiler_params=pltpu.CompilerParams(
            dimension_semantics=("parallel", "arbitrary"),
            vmem_limit_bytes=vmem_limit),
        cost_estimate=pl.CostEstimate(
            flops=2 * n_pad * fin_pad * c_pad + 8 * n_pad * c_pad,
            transcendentals=n_pad,
            bytes_accessed=bytes_accessed),
    )(x, w_t_pad, b_pad, gamma_pad, beta_pad)

    return out  # (n_pad, c_pad); consumer slices [:n, :nclass]


def init_params(key, ninput, nclass):
    """Deterministic init matching the PyTorch module's __init__ (logical layout)."""
    kw, kb = jax.random.split(key)
    # nn.init.xavier_uniform_ on weight of shape (nclass, ninput)
    limit_w = (6.0 / (ninput + nclass)) ** 0.5
    weight = jax.random.uniform(kw, (nclass, ninput), jnp.float32,
                                minval=-limit_w, maxval=limit_w)
    # nn.Linear default bias init: U(-1/sqrt(fan_in), 1/sqrt(fan_in))
    limit_b = 1.0 / (ninput ** 0.5)
    bias = jax.random.uniform(kb, (nclass,), jnp.float32,
                              minval=-limit_b, maxval=limit_b)
    gamma = jnp.ones((nclass,), jnp.float32)   # LayerNorm defaults
    beta = jnp.zeros((nclass,), jnp.float32)
    return weight, bias, gamma, beta


def pack_params(weight, bias, gamma, beta, *, compute_dtype=jnp.bfloat16):
    """Kernel-friendly layouts: W transposed to (F_in, C_pad), lane-padded to 128."""
    nclass, ninput = weight.shape
    c_pad = _round_up(nclass, LANES)
    w_t = weight.T.astype(compute_dtype)                              # (F_in, nclass)
    w_t_pad = jnp.pad(w_t, ((0, 0), (0, c_pad - nclass)))             # zero-pad lanes
    b_pad = jnp.pad(bias.reshape(1, nclass), ((0, 0), (0, c_pad - nclass)))
    g_pad = jnp.pad(gamma.reshape(1, nclass), ((0, 0), (0, c_pad - nclass)))
    be_pad = jnp.pad(beta.reshape(1, nclass), ((0, 0), (0, c_pad - nclass)))
    return w_t_pad, b_pad, g_pad, be_pad


if __name__ == "__main__":
    N = 8        # number of nodes / batch rows (small demo)
    NINPUT = 32  # input feature dim
    NCLASS = 16  # number of classes (LayerNorm dim)

    key = jax.random.PRNGKey(0)
    kx, kp = jax.random.split(key)

    x_f32 = jax.random.normal(kx, (N, NINPUT), jnp.float32)
    weight, bias, gamma, beta = init_params(kp, NINPUT, NCLASS)

    # bf16 inputs (halves HBM traffic; MXU native rate), f32 accumulation in-kernel.
    x = x_f32.astype(jnp.bfloat16)
    w_t_pad, b_pad, g_pad, be_pad = pack_params(weight, bias, gamma, beta,
                                                compute_dtype=jnp.bfloat16)

    out_pad = gcn_classifier_forward(x, w_t_pad, b_pad, g_pad, be_pad,
                                     nclass=NCLASS, block_rows=1024,
                                     out_dtype=jnp.bfloat16)
    out_pad = jax.block_until_ready(out_pad)
    out = out_pad[:N, :NCLASS].astype(jnp.float32)   # "consumer" slice of padded output

    # Pure-JAX reference (bf16 linear with f32 accumulate, f32 layernorm).
    w_t_bf16 = weight.T.astype(jnp.bfloat16)
    y_ref = jnp.dot(x, w_t_bf16, preferred_element_type=jnp.float32) + bias
    mu = y_ref.mean(-1, keepdims=True)
    var = ((y_ref - mu) ** 2).mean(-1, keepdims=True)
    ref = (y_ref - mu) / jnp.sqrt(var + LN_EPS) * gamma + beta

    assert out.shape == (N, NCLASS), out.shape
    # bf16 output -> ~0.4% relative precision on O(1) LayerNorm outputs.
    assert jnp.allclose(out, ref, atol=3e-2, rtol=3e-2), float(jnp.max(jnp.abs(out - ref)))

    print("KERNEL_OK")
</pallas_src>

<mosaic_0001>
module attributes {stable_mosaic.version = 11 : i64} {
  func.func @gcn_classifier_kernel(%arg0: i32, %arg1: i32, %arg2: memref<16x32xbf16, #tpu.memory_space<vmem>>, %arg3: memref<32x128xbf16, #tpu.memory_space<vmem>>, %arg4: memref<1x128xf32, #tpu.memory_space<vmem>>, %arg5: memref<1x128xf32, #tpu.memory_space<vmem>>, %arg6: memref<1x128xf32, #tpu.memory_space<vmem>>, %arg7: memref<16x128xbf16, #tpu.memory_space<vmem>>, %arg8: memref<16x128xf32, #tpu.memory_space<vmem>>) attributes {dimension_semantics = [#tpu.dimension_semantics<parallel>, #tpu.dimension_semantics<arbitrary>], iteration_bounds = array<i64: 1, 1>, scalar_prefetch = 0 : i64, scratch_operands = 1 : i64, tpu.core_type = #tpu.core_type<tc>, window_params = [{transform_indices = @transform_0, window_bounds = array<i64: 16, 32>}, {pipeline_mode = #tpu.pipeline_mode<synchronous>, transform_indices = @transform_1, window_bounds = array<i64: 32, 128>}, {pipeline_mode = #tpu.pipeline_mode<synchronous>, transform_indices = @transform_2, window_bounds = array<i64: 1, 128>}, {pipeline_mode = #tpu.pipeline_mode<synchronous>, transform_indices = @transform_3, window_bounds = array<i64: 1, 128>}, {pipeline_mode = #tpu.pipeline_mode<synchronous>, transform_indices = @transform_4, window_bounds = array<i64: 1, 128>}, {transform_indices = @transform_5, window_bounds = array<i64: 16, 128>}]} {
    %c0_i32 = arith.constant 0 : i32
    %0 = arith.cmpi eq, %arg1, %c0_i32 : i32
    %1 = arith.extui %0 : i1 to i32
    %c0_i32_0 = arith.constant 0 : i32
    %2 = arith.cmpi ne, %1, %c0_i32_0 : i32
    scf.if %2 {
      %cst_10 = arith.constant 0.000000e+00 : f32
      %12 = vector.broadcast %cst_10 : f32 to vector<16x128xf32>
      %c0_11 = arith.constant 0 : index
      %c0_12 = arith.constant 0 : index
      %13 = vector.load %arg8[%c0_11, %c0_12] : memref<16x128xf32, #tpu.memory_space<vmem>>, vector<16x128xf32>
      tpu.vector_store %arg8[%c0_11, %c0_12], %12 {strides = array<i32>} : memref<16x128xf32, #tpu.memory_space<vmem>>, vector<16x128xf32>,
    } else {
    }
    %c0 = arith.constant 0 : index
    %c0_1 = arith.constant 0 : index
    %3 = vector.load %arg8[%c0, %c0_1] : memref<16x128xf32, #tpu.memory_space<vmem>>, vector<16x128xf32>
    %c0_2 = arith.constant 0 : index
    %c0_3 = arith.constant 0 : index
    %4 = vector.load %arg2[%c0_2, %c0_3] : memref<16x32xbf16, #tpu.memory_space<vmem>>, vector<16x32xbf16>
    %c0_4 = arith.constant 0 : index
    %c0_5 = arith.constant 0 : index
    %5 = vector.load %arg3[%c0_4, %c0_5] : memref<32x128xbf16, #tpu.memory_space<vmem>>, vector<32x128xbf16>
    %cst = arith.constant dense<0.000000e+00> : vector<16x128xf32>
    %6 = tpu.matmul %4, %5, %cst {dimension_numbers = #tpu.dot_dimension_numbers<[1], [0], [0], [1], [0, 0, 1, 1], [], []>} : vector<16x32xbf16>, vector<32x128xbf16>, vector<16x128xf32> -> vector<16x128xf32>
    %7 = arith.addf %3, %6 : vector<16x128xf32>
    %c0_6 = arith.constant 0 : index
    %c0_7 = arith.constant 0 : index
    %8 = vector.load %arg8[%c0_6, %c0_7] : memref<16x128xf32, #tpu.memory_space<vmem>>, vector<16x128xf32>
    tpu.vector_store %arg8[%c0_6, %c0_7], %7 {strides = array<i32>} : memref<16x128xf32, #tpu.memory_space<vmem>>, vector<16x128xf32>,
    %c0_i32_8 = arith.constant 0 : i32
    %9 = arith.cmpi eq, %arg1, %c0_i32_8 : i32
    %10 = arith.extui %9 : i1 to i32
    %c0_i32_9 = arith.constant 0 : i32
    %11 = arith.cmpi ne, %10, %c0_i32_9 : i32
    scf.if %11 {
      %c0_10 = arith.constant 0 : index
      %c0_11 = arith.constant 0 : index
      %12 = vector.load %arg8[%c0_10, %c0_11] : memref<16x128xf32, #tpu.memory_space<vmem>>, vector<16x128xf32>
      %c0_12 = arith.constant 0 : index
      %c0_13 = arith.constant 0 : index
      %13 = vector.load %arg4[%c0_12, %c0_13] : memref<1x128xf32, #tpu.memory_space<vmem>>, vector<1x128xf32>
      %14 = vector.broadcast %13 : vector<1x128xf32> to vector<16x128xf32>
      %15 = arith.addf %12, %14 : vector<16x128xf32>
      %cst_14 = arith.constant dense<0.000000e+00> : vector<16xf32>
      %16 = vector.multi_reduction <add>, %15, %cst_14 [1] : vector<16x128xf32> to vector<16xf32>
      %17 = vector.shape_cast %16 : vector<16xf32> to vector<16x1xf32>
      %18 = arith.mulf %15, %15 : vector<16x128xf32>
      %cst_15 = arith.constant dense<0.000000e+00> : vector<16xf32>
      %19 = vector.multi_reduction <add>, %18, %cst_15 [1] : vector<16x128xf32> to vector<16xf32>
      %20 = vector.shape_cast %19 : vector<16xf32> to vector<16x1xf32>
      %cst_16 = arith.constant 6.250000e-02 : f32
      %21 = vector.broadcast %cst_16 : f32 to vector<16x1xf32>
      %22 = arith.mulf %17, %21 : vector<16x1xf32>
      %cst_17 = arith.constant 6.250000e-02 : f32
      %23 = vector.broadcast %cst_17 : f32 to vector<16x1xf32>
      %24 = arith.mulf %20, %23 : vector<16x1xf32>
      %25 = arith.mulf %22, %22 : vector<16x1xf32>
      %26 = arith.subf %24, %25 : vector<16x1xf32>
      %cst_18 = arith.constant 0.000000e+00 : f32
      %27 = vector.broadcast %cst_18 : f32 to vector<16x1xf32>
      %28 = arith.maximumf %26, %27 : vector<16x1xf32>
      %cst_19 = arith.constant 9.99999974E-6 : f32
      %29 = vector.broadcast %cst_19 : f32 to vector<16x1xf32>
      %30 = arith.addf %28, %29 : vector<16x1xf32>
      %31 = math.rsqrt %30 : vector<16x1xf32>
      %32 = vector.broadcast %22 : vector<16x1xf32> to vector<16x128xf32>
      %33 = arith.subf %15, %32 : vector<16x128xf32>
      %34 = vector.broadcast %31 : vector<16x1xf32> to vector<16x128xf32>
      %35 = arith.mulf %33, %34 : vector<16x128xf32>
      %c0_20 = arith.constant 0 : index
      %c0_21 = arith.constant 0 : index
      %36 = vector.load %arg5[%c0_20, %c0_21] : memref<1x128xf32, #tpu.memory_space<vmem>>, vector<1x128xf32>
      %37 = vector.broadcast %36 : vector<1x128xf32> to vector<16x128xf32>
      %38 = arith.mulf %35, %37 : vector<16x128xf32>
      %c0_22 = arith.constant 0 : index
      %c0_23 = arith.constant 0 : index
      %39 = vector.load %arg6[%c0_22, %c0_23] : memref<1x128xf32, #tpu.memory_space<vmem>>, vector<1x128xf32>
      %40 = vector.broadcast %39 : vector<1x128xf32> to vector<16x128xf32>
      %41 = arith.addf %38, %40 : vector<16x128xf32>
      %42 = arith.truncf %41 : vector<16x128xf32> to vector<16x128xbf16>
      %c0_24 = arith.constant 0 : index
      %c0_25 = arith.constant 0 : index
      %43 = vector.load %arg7[%c0_24, %c0_25] : memref<16x128xbf16, #tpu.memory_space<vmem>>, vector<16x128xbf16>
      tpu.vector_store %arg7[%c0_24, %c0_25], %42 {strides = array<i32>} : memref<16x128xbf16, #tpu.memory_space<vmem>>, vector<16x128xbf16>,
    } else {
    }
    return
  }
  func.func @transform_0(%arg0: i32, %arg1: i32) -> (i32, i32) {
    %c0_i32 = arith.constant 0 : i32
    return %arg0, %arg1 : i32, i32
  }
  func.func @transform_1(%arg0: i32, %arg1: i32) -> (i32, i32) {
    %c0_i32 = arith.constant 0 : i32
    %c0_i32_0 = arith.constant 0 : i32
    return %arg1, %c0_i32 : i32, i32
  }
  func.func @transform_2(%arg0: i32, %arg1: i32) -> (i32, i32) {
    %c0_i32 = arith.constant 0 : i32
    %c0_i32_0 = arith.constant 0 : i32
    %c0_i32_1 = arith.constant 0 : i32
    return %c0_i32, %c0_i32_0 : i32, i32
  }
  func.func @transform_3(%arg0: i32, %arg1: i32) -> (i32, i32) {
    %c0_i32 = arith.constant 0 : i32
    %c0_i32_0 = arith.constant 0 : i32
    %c0_i32_1 = arith.constant 0 : i32
    return %c0_i32, %c0_i32_0 : i32, i32
  }
  func.func @transform_4(%arg0: i32, %arg1: i32) -> (i32, i32) {
    %c0_i32 = arith.constant 0 : i32
    %c0_i32_0 = arith.constant 0 : i32
    %c0_i32_1 = arith.constant 0 : i32
    return %c0_i32, %c0_i32_0 : i32, i32
  }
  func.func @transform_5(%arg0: i32, %arg1: i32) -> (i32, i32) {
    %c0_i32 = arith.constant 0 : i32
    %c0_i32_0 = arith.constant 0 : i32
    return %arg0, %c0_i32 : i32, i32
  }
}

</mosaic_0001>

<bundles_post_ra>
// kernel: tpu_custom_call.1
= control target key start
LH: loop header
LB: loop body
LE: loop exit
PB: predicated region body
PF: predicated region fallthrough
CT: control target
= control target key end

     0   :  { %10 = vsyncpa [#allocation4], 0  ;;  %s373_s0 = inlined_call_operand.hbm [shape: bf16[16,32], index: 0, kind: input, shape index: {}]   ;;  %s374_s1 = inlined_call_operand.hbm [shape: bf16[32,128], index: 1, kind: input, shape index: {}]   ;;  %s375_s2 = inlined_call_operand.vmem [shape: f32[1,128], index: 2, kind: input, shape index: {}]   ;;  %s376_s3 = inlined_call_operand.vmem [shape: f32[1,128], index: 3, kind: input, shape index: {}]   ;;  %s377_s4 = inlined_call_operand.vmem [shape: f32[1,128], index: 4, kind: input, shape index: {}]   ;;  %s378_s5 = inlined_call_operand.hbm [shape: bf16[16,128], index: 5, kind: output, shape index: {}]  }
   0x1   :  { %11 = vsyncpa [#allocation7], 0 }
   0x2   :  { %12 = vsyncpa [#allocation5], 0  ;;  %s17_s20 = sshll.u32 %s373_s0, 4  ;;  %s311_s21 = smov [#allocation3]   ;;  %s18_s20 = int_to_ptr.hbm [resolvable:$true] %s17_s20 }
   0x3   :  { %s19_s22 = sshll.u32 %s311_s21, 4  ;;  %s30_s25 = sshll.u32 %s374_s1, 4  ;;  %s20_s22 = int_to_ptr.vmem [resolvable:$true] %s19_s22  ;;  %s31_s25 = int_to_ptr.hbm [resolvable:$true] %s30_s25 }
   0x4   :  { %s312_s26 = smov 64   ;;  %s313_s27 = smov 4  }
   0x5   :  { %25 = dma.hbm_to_vmem [thread:$0]  %s18_s20, 128, %s20_s22, [#allocation4], %s312_s26, %s312_s26, %s313_s27  }
   0x6   :  { %s314_s28 = smov [#allocation6]  }
   0x7   :  { %s32_s29 = sshll.u32 %s314_s28, 4  ;;  %s33_s29 = int_to_ptr.vmem [resolvable:$true] %s32_s29 }
   0x8   :  { %38 = dma.hbm_to_vmem [thread:$0]  %s31_s25, 256, %s33_s29, [#allocation7], %s312_s26, %s312_s26, %s313_s27  }
   0x9   :  { %305 = dma.done.wait [#allocation4], 128  }
   0xa   :  { %306 = vsyncadd [#allocation4], 4294967168 }
   0xb   :  { %307 = dma.done.wait [#allocation7], 256  }
   0xc   :  { %308 = vsyncadd [#allocation7], 4294967040  ;;  %v215_v0 = vld [vmem:[#allocation6 + $0x8] sm:$0xff]  ;;  %v214_v1 = vld [vmem:[#allocation6] sm:$0xff]  ;;  %vm85_vm0 = vcmask 261120   ;;  %s315_s8 = smov [#allocation8]  }
   0xd   :  { %95 = vmatpush.bf16.msra.mxu0 %v215_v0  ;;  %v213_v2 = vld [vmem:[#allocation3] sm:$0xff]  ;;  %s184_s9 = sshll.u32 %s315_s8, 4  ;;  %s186_s12 = sshll.u32 %s378_s5, 4  ;;  %s185_s9 = int_to_ptr.vmem [resolvable:$true] %s184_s9  ;;  %s187_s12 = int_to_ptr.hbm [resolvable:$true] %s186_s12 }
   0xe   :  { %v226_v3 = vld [vmem:[%s375_s2] ss:$0 sm:$0xff] }
   0xf   :  { %v227_v40 = vld [vmem:[%s376_s3] ss:$0 sm:$0xff] }
  0x10   :  { %v228_v46 = vld [vmem:[%s377_s4] ss:$0 sm:$0xff] }
  0x11   :  { %96 = vmatpush.bf16.msra.mxu0 %v214_v1 }
  0x14   :  { %212 = vmatmul.msk.bf16.vlgmr.msra.gmra.mxu0 %vm85_vm0, %v213_v2 }
  0x91   :  { %v98_v4 = vpop.f32.mrf.mxu0 }
  0x92   :  { %v116_v5 = vadd.f32 %v226_v3, %v98_v4 }
  0x94   :  { %118 = vadd.xlane.f32.xlu0 %v116_v5  ;;  %v122_v6 = vmul.f32 %v116_v5, %v116_v5 }
  0x96   :  { %124 = vadd.xlane.f32.xlu1 %v122_v6 }
  0x99   :  { %v100_v7 = vpop.f32.mrf.mxu0 }
  0x9a   :  { %v117_v8 = vadd.f32 %v226_v3, %v100_v7 }
  0x9c   :  { %120 = vadd.xlane.f32.xlu0 %v117_v8  ;;  %v123_v9 = vmul.f32 %v117_v8, %v117_v8 }
  0x9e   :  { %126 = vadd.xlane.f32.xlu1 %v123_v9 }
 0x107   :  { %v119_v10 = vpop.xlane.xlu0 %118 }
 0x108   :  { %v128_v11 = vmul.f32 0.0625, %v119_v10 }
 0x109   :  { %v125_v12 = vpop.xlane.xlu1 %124 }
 0x10a   :  { %v132_v13 = vmul.f32 %v128_v11, %v128_v11  ;;  %v130_v14 = vmul.f32 0.0625, %v125_v12  ;;  %v160_v37 = vsub.f32 %v116_v5, %v128_v11 }
 0x10c   :  { %v134_v15 = vsub.f32 %v130_v14, %v132_v13 }
 0x10e   :  { %v136_v16 = vmax.f32 %v134_v15, 0.0 }
 0x10f   :  { %v121_v17 = vpop.xlane.xlu0 %120 }
 0x110   :  { %v138_v18 = vadd.f32 1e-05, %v136_v16  ;;  %v129_v19 = vmul.f32 0.0625, %v121_v17 }
 0x111   :  { %v127_v20 = vpop.xlane.xlu1 %126 }
 0x112   :  { %229 = vrsqrt.f32 %v138_v18  ;;  %v133_v21 = vmul.f32 %v129_v19, %v129_v19  ;;  %v131_v22 = vmul.f32 0.0625, %v127_v20  ;;  %vm146_vm2 = vweird.f32 %v138_v18 }
 0x113   :  { %v161_v42 = vsub.f32 %v117_v8, %v129_v19 }
 0x114   :  { %v135_v23 = vsub.f32 %v131_v22, %v133_v21 }
 0x116   :  { %v137_v24 = vmax.f32 %v135_v23, 0.0 }
 0x118   :  { %v230_v25 = vpop.eup %229  ;;  %v139_v27 = vadd.f32 1e-05, %v137_v24 }
 0x119   :  { %v141_v26 = vmul.f32 %v230_v25, %v138_v18  ;;  %vm147_vm1 = vweird.f32 %v230_v25 }
 0x11a   :  { %231 = vrsqrt.f32 %v139_v27  ;;  %vm148_vm3 = vmor %vm146_vm2, %vm147_vm1  ;;  %vm156_vm5 = vweird.f32 %v139_v27 }
 0x11b   :  { %v142_v28 = vmul.f32 %v230_v25, %v141_v26 }
 0x11d   :  { %v143_v29 = vmul.f32 0.5, %v142_v28 }
 0x11f   :  { %v144_v30 = vsub.f32 1.5, %v143_v29 }
 0x120   :  { %v232_v31 = vpop.eup %231 }
 0x121   :  { %v145_v32 = vmul.f32 %v230_v25, %v144_v30  ;;  %v151_v33 = vmul.f32 %v232_v31, %v139_v27  ;;  %vm157_vm4 = vweird.f32 %v232_v31 }
 0x122   :  { %vm158_vm6 = vmor %vm156_vm5, %vm157_vm4 }
 0x123   :  { %v152_v34 = vmul.f32 %v232_v31, %v151_v33  ;;  %v149_v35 = vsel %vm148_vm3, %v230_v25, %v145_v32 }
 0x124   :  { %v162_v39 = vmul.f32 %v160_v37, %v149_v35 }
 0x125   :  { %v153_v36 = vmul.f32 0.5, %v152_v34 }
 0x126   :  { %v168_v45 = vmul.f32 %v227_v40, %v162_v39 }
 0x127   :  { %v154_v38 = vsub.f32 1.5, %v153_v36 }
 0x128   :  { %v174_v48 = vadd.f32 %v228_v46, %v168_v45 }
 0x129   :  { %v155_v41 = vmul.f32 %v232_v31, %v154_v38 }
 0x12b   :  { %v159_v43 = vsel %vm158_vm6, %v232_v31, %v155_v41 }
 0x12c   :  { %v163_v44 = vmul.f32 %v161_v42, %v159_v43 }
 0x12e   :  { %v169_v47 = vmul.f32 %v227_v40, %v163_v44 }
 0x130   :  { %v175_v49 = vadd.f32 %v228_v46, %v169_v47 }
 0x132   :  { %v219_v50 = vpack.c.bf16 %v175_v49, %v174_v48 }
 0x134   :  { %220 = vst [vmem:[#allocation8] sm:$0xff] %v219_v50  }
 0x135   :  { %192 = dma.vmem_to_hbm [thread:$0]  %s185_s9, 128, %s187_s12, [#allocation5], %s312_s26, %s312_s26, %s313_s27  }
 0x136   :  { %309 = dma.done.wait [#allocation5], 128  }
 0x137   :  { %310 = vsyncadd [#allocation5], 4294967168 }
 0x138   :  { %197 = vsyncpa [#allocation4], 1 }
 0x139   :  { %198 = vsyncpa [#allocation7], 1 }
 0x13a   :  { %199 = vsyncpa [#allocation5], 1 }

</bundles_post_ra>
